<compile_context>
chip_gen: v7x
topology: tpu7x:2x2x1
jax: 0.10.0
libtpu: 0.0.40
codegen_flags: <defaults>
</compile_context>

<pallas_src>
import functools

import jax
import jax.numpy as jnp
from jax.experimental import pallas as pl
from jax.experimental.pallas import tpu as pltpu


# ----------------------------------------------------------------------------
# Pallas kernel: one batch element per grid step; all three convs (BN folded),
# ReLUs and the residual branch are fused.  Layout: (channels, L) with L on lanes.
# ----------------------------------------------------------------------------
def conv_layer_kernel(x_ref, wa_ref, w2s_ref, w3_ref, b_ref, o_ref, *,
                      c_hid, c_out, res_off, b2_off, b3_off):
    x = x_ref[0]                                   # (C_in, L)   L on lanes
    l = x.shape[1]

    # Fused [conv1(BN-folded) ; residual conv] : one matmul over the shared x tile.
    hc = (jnp.dot(wa_ref[...], x, preferred_element_type=jnp.float32)
          + b_ref[0:res_off + c_out, :])           # (res_off + C_out, L)
    h1 = jnp.maximum(hc[0:c_hid, :], 0.0)          # (C_hid, L)  conv1 branch (ReLU)
    r = hc[res_off:res_off + c_out, :]             # (C_out, L)  residual branch (no ReLU)

    # Conv1d(hid, hid, k=3, padding=1) + BN (folded) + ReLU as ONE matmul.
    # out[:, l] = W0 @ h1[:, l-1] + W1 @ h1[:, l] + W2 @ h1[:, l+1]   (zeros outside).
    col = jax.lax.broadcasted_iota(jnp.int32, (c_hid, l), 1)
    prev = jnp.where(col == 0, 0.0, pltpu.roll(h1, shift=1, axis=1))      # h1[:, l-1]
    nxt = jnp.where(col == l - 1, 0.0, pltpu.roll(h1, shift=l - 1, axis=1))  # h1[:, l+1]
    h_stack = jnp.concatenate([prev, h1, nxt], axis=0)                    # (3*C_hid, L)
    h2 = jnp.maximum(
        jnp.dot(w2s_ref[...], h_stack, preferred_element_type=jnp.float32)
        + b_ref[b2_off:b2_off + c_hid, :], 0.0)                           # (C_hid, L)

    # Conv1d(hid, out, k=1) + ReLU, then residual add.
    h3 = jnp.maximum(
        jnp.dot(w3_ref[...], h2, preferred_element_type=jnp.float32)
        + b_ref[b3_off:b3_off + c_out, :], 0.0)                           # (C_out, L)

    o_ref[0] = (h3 + r).astype(o_ref.dtype)


# ----------------------------------------------------------------------------
# Wrapper: BN folding, weight/bias packing, layout glue + pallas_call
# ----------------------------------------------------------------------------
def conv_layer_forward(x_ncl, params, stride):
    """x_ncl: (N, C_in, L) float32, PyTorch layout. Returns (N, C_out, L_out)."""
    eps = 1e-5
    f32 = jnp.float32

    c_hid, c_in = params["conv1_w"].shape[0], params["conv1_w"].shape[1]
    c_out = params["conv3_w"].shape[0]

    # Fold BN1 into conv1 (k=1).
    s1 = params["bn1_gamma"] / jnp.sqrt(params["bn1_var"] + eps)
    w1 = params["conv1_w"][:, :, 0] * s1[:, None]                       # (C_hid, C_in)
    b1 = (params["conv1_b"] - params["bn1_mean"]) * s1 + params["bn1_beta"]

    # Fold BN2 into conv2 (k=3) and stack the 3 taps side by side: (C_hid, 3*C_hid).
    s2 = params["bn2_gamma"] / jnp.sqrt(params["bn2_var"] + eps)
    w2 = params["conv2_w"] * s2[:, None, None]                          # (C_hid, C_hid, 3)
    w2s = jnp.concatenate([w2[:, :, 0], w2[:, :, 1], w2[:, :, 2]], axis=1)
    b2 = (params["conv2_b"] - params["bn2_mean"]) * s2 + params["bn2_beta"]

    w3 = params["conv3_w"][:, :, 0]                                     # (C_out, C_hid)
    b3 = params["conv3_b"]
    wr = params["res_w"][:, :, 0]                                       # (C_out, C_in)
    br = params["res_b"]

    def rup8(v):
        return -(-v // 8) * 8

    # Fuse conv1 + residual conv weights (both consume the same strided x).
    res_off = rup8(c_hid)                       # residual rows start sublane-aligned
    wa = jnp.zeros((res_off + c_out, c_in), f32)
    wa = wa.at[:c_hid].set(w1).at[res_off:].set(wr)

    # All biases in one (C_total, 1) column array with 8-aligned segments.
    b2_off = rup8(res_off + c_out)
    b3_off = b2_off + rup8(c_hid)
    n_bias = b3_off + rup8(c_out)
    biases = jnp.zeros((n_bias, 1), f32)
    biases = (biases.at[:c_hid, 0].set(b1)
                    .at[res_off:res_off + c_out, 0].set(br)
                    .at[b2_off:b2_off + c_hid, 0].set(b2)
                    .at[b3_off:b3_off + c_out, 0].set(b3))

    # Layout: stay NCL (lane-dense on L).  Apply the stride of the two k=1 stride-s convs
    # with a single strided slice on the last axis (no transpose, no layout pass).
    xs = x_ncl if stride == 1 else x_ncl[:, :, ::stride]                # (N, C_in, L_out)
    n, _, l_out = xs.shape

    kernel = functools.partial(conv_layer_kernel, c_hid=c_hid, c_out=c_out,
                               res_off=res_off, b2_off=b2_off, b3_off=b3_off)

    def resident(arr):  # small constant 2-D operand, stays resident across the grid
        return pl.BlockSpec(arr.shape, lambda b: (0, 0))

    out = pl.pallas_call(
        kernel,
        out_shape=jax.ShapeDtypeStruct((n, c_out, l_out), jnp.float32),
        grid_spec=pltpu.PrefetchScalarGridSpec(
            num_scalar_prefetch=0,
            grid=(n,),
            in_specs=[
                pl.BlockSpec((1, c_in, l_out), lambda b: (b, 0, 0)),
                resident(wa), resident(w2s), resident(w3), resident(biases),
            ],
            out_specs=pl.BlockSpec((1, c_out, l_out), lambda b: (b, 0, 0)),
        ),
        compiler_params=pltpu.CompilerParams(dimension_semantics=("parallel",)),
    )(xs, wa, w2s, w3, biases)

    return out                                                          # (N, C_out, L_out)


# ----------------------------------------------------------------------------
# Pure-JAX reference (mirrors the PyTorch forward, BN in eval mode) for checking.
# ----------------------------------------------------------------------------
def conv_layer_reference(x_ncl, params, stride):
    eps = 1e-5

    def conv1d(x, w, b, stride=1, padding=0):
        return jax.lax.conv_general_dilated(
            x, w, window_strides=(stride,), padding=[(padding, padding)],
            dimension_numbers=("NCH", "OIH", "NCH")) + b[None, :, None]

    def bn(x, gamma, beta, mean, var):
        return ((x - mean[None, :, None]) / jnp.sqrt(var[None, :, None] + eps)
                * gamma[None, :, None] + beta[None, :, None])

    h = conv1d(x_ncl, params["conv1_w"], params["conv1_b"], stride=stride)
    h = jax.nn.relu(bn(h, params["bn1_gamma"], params["bn1_beta"],
                       params["bn1_mean"], params["bn1_var"]))
    h = conv1d(h, params["conv2_w"], params["conv2_b"], padding=1)
    h = jax.nn.relu(bn(h, params["bn2_gamma"], params["bn2_beta"],
                       params["bn2_mean"], params["bn2_var"]))
    h = jax.nn.relu(conv1d(h, params["conv3_w"], params["conv3_b"]))
    r = conv1d(x_ncl, params["res_w"], params["res_b"], stride=stride)
    return h + r


def make_params(key, c_in, c_hid, c_out):
    ks = jax.random.split(key, 12)
    p = {
        "conv1_w": 0.3 * jax.random.normal(ks[0], (c_hid, c_in, 1), jnp.float32),
        "conv1_b": 0.1 * jax.random.normal(ks[1], (c_hid,), jnp.float32),
        "bn1_gamma": 0.5 + jax.random.uniform(ks[2], (c_hid,), jnp.float32),
        "bn1_beta": 0.1 * jax.random.normal(ks[3], (c_hid,), jnp.float32),
        "bn1_mean": 0.1 * jax.random.normal(ks[4], (c_hid,), jnp.float32),
        "bn1_var": 0.5 + jax.random.uniform(ks[5], (c_hid,), jnp.float32),
        "conv2_w": 0.3 * jax.random.normal(ks[6], (c_hid, c_hid, 3), jnp.float32),
        "conv2_b": 0.1 * jax.random.normal(ks[7], (c_hid,), jnp.float32),
        "bn2_gamma": 0.5 + jax.random.uniform(ks[8], (c_hid,), jnp.float32),
        "bn2_beta": 0.1 * jax.random.normal(ks[9], (c_hid,), jnp.float32),
        "bn2_mean": 0.1 * jax.random.normal(ks[10], (c_hid,), jnp.float32),
        "bn2_var": 0.5 + jax.random.uniform(ks[11], (c_hid,), jnp.float32),
    }
    ks2 = jax.random.split(jax.random.fold_in(key, 1), 4)
    p["conv3_w"] = 0.3 * jax.random.normal(ks2[0], (c_out, c_hid, 1), jnp.float32)
    p["conv3_b"] = 0.1 * jax.random.normal(ks2[1], (c_out,), jnp.float32)
    p["res_w"] = 0.3 * jax.random.normal(ks2[2], (c_out, c_in, 1), jnp.float32)
    p["res_b"] = 0.1 * jax.random.normal(ks2[3], (c_out,), jnp.float32)
    return p


if __name__ == "__main__":
    # in_channels != out_channels so the residual branch exists (as in the PyTorch module).
    # L chosen so that L_out = 128 after stride-2 downsampling -> fully lane-dense blocks.
    N, C_IN, C_HID, C_OUT, L = 2, 4, 8, 6, 256
    DOWNSAMPLING = True
    stride = 2 if DOWNSAMPLING else 1

    key = jax.random.PRNGKey(0)
    k_x, k_p = jax.random.split(key)
    x = jax.random.normal(k_x, (N, C_IN, L), jnp.float32)
    params = make_params(k_p, C_IN, C_HID, C_OUT)

    out = jax.block_until_ready(conv_layer_forward(x, params, stride))
    ref = jax.block_until_ready(conv_layer_reference(x, params, stride))

    assert out.shape == ref.shape, (out.shape, ref.shape)
    assert jnp.allclose(out, ref, rtol=1e-4, atol=1e-4), float(jnp.max(jnp.abs(out - ref)))

    print("KERNEL_OK")
</pallas_src>

<mosaic_0001>
module attributes {stable_mosaic.version = 11 : i64} {
  func.func @conv_layer_kernel(%arg0: i32, %arg1: memref<1x4x128xf32, #tpu.memory_space<vmem>>, %arg2: memref<14x4xf32, #tpu.memory_space<vmem>>, %arg3: memref<8x24xf32, #tpu.memory_space<vmem>>, %arg4: memref<6x8xf32, #tpu.memory_space<vmem>>, %arg5: memref<32x1xf32, #tpu.memory_space<vmem>>, %arg6: memref<1x6x128xf32, #tpu.memory_space<vmem>>) attributes {dimension_semantics = [#tpu.dimension_semantics<parallel>], iteration_bounds = array<i64: 2>, scalar_prefetch = 0 : i64, scratch_operands = 0 : i64, tpu.core_type = #tpu.core_type<tc>, window_params = [{transform_indices = @transform_0, window_bounds = array<i64: 1, 4, 128>}, {pipeline_mode = #tpu.pipeline_mode<synchronous>, transform_indices = @transform_1, window_bounds = array<i64: 14, 4>}, {pipeline_mode = #tpu.pipeline_mode<synchronous>, transform_indices = @transform_2, window_bounds = array<i64: 8, 24>}, {pipeline_mode = #tpu.pipeline_mode<synchronous>, transform_indices = @transform_3, window_bounds = array<i64: 6, 8>}, {pipeline_mode = #tpu.pipeline_mode<synchronous>, transform_indices = @transform_4, window_bounds = array<i64: 32, 1>}, {transform_indices = @transform_5, window_bounds = array<i64: 1, 6, 128>}]} {
    %c0 = arith.constant 0 : index
    %c0_0 = arith.constant 0 : index
    %c0_1 = arith.constant 0 : index
    %0 = vector.load %arg1[%c0, %c0_0, %c0_1] : memref<1x4x128xf32, #tpu.memory_space<vmem>>, vector<1x4x128xf32>
    %1 = vector.shape_cast %0 : vector<1x4x128xf32> to vector<4x128xf32>
    %c0_2 = arith.constant 0 : index
    %c0_3 = arith.constant 0 : index
    %2 = vector.load %arg2[%c0_2, %c0_3] : memref<14x4xf32, #tpu.memory_space<vmem>>, vector<14x4xf32>
    %cst = arith.constant dense<0.000000e+00> : vector<14x128xf32>
    %3 = tpu.matmul %2, %1, %cst {dimension_numbers = #tpu.dot_dimension_numbers<[1], [0], [0], [1], [0, 0, 1, 1], [], []>} : vector<14x4xf32>, vector<4x128xf32>, vector<14x128xf32> -> vector<14x128xf32>
    %c0_4 = arith.constant 0 : index
    %c0_5 = arith.constant 0 : index
    %4 = vector.load %arg5[%c0_4, %c0_5] : memref<32x1xf32, #tpu.memory_space<vmem>>, vector<14x1xf32>
    %5 = vector.broadcast %4 : vector<14x1xf32> to vector<14x128xf32>
    %6 = arith.addf %3, %5 : vector<14x128xf32>
    %7 = vector.extract_strided_slice %6 {offsets = [0, 0], sizes = [8, 128], strides = [1, 1]} : vector<14x128xf32> to vector<8x128xf32>
    %cst_6 = arith.constant 0.000000e+00 : f32
    %8 = vector.broadcast %cst_6 : f32 to vector<8x128xf32>
    %9 = arith.maximumf %7, %8 : vector<8x128xf32>
    %10 = vector.extract_strided_slice %6 {offsets = [8, 0], sizes = [6, 128], strides = [1, 1]} : vector<14x128xf32> to vector<6x128xf32>
    %11 = tpu.iota {dimensions = array<i32: 1>} : vector<8x128xi32>
    %c0_i32 = arith.constant 0 : i32
    %12 = vector.broadcast %c0_i32 : i32 to vector<8x128xi32>
    %13 = arith.cmpi eq, %11, %12 : vector<8x128xi32>
    %c1_i32 = arith.constant 1 : i32
    %14 = tpu.dynamic_rotate %9 by %c1_i32 dim 1 : vector<8x128xf32>, i32 -> vector<8x128xf32>
    %cst_7 = arith.constant 0.000000e+00 : f32
    %15 = vector.broadcast %cst_7 : f32 to vector<8x128xf32>
    %16 = arith.select %13, %15, %14 : vector<8x128xi1>, vector<8x128xf32>
    %c127_i32 = arith.constant 127 : i32
    %17 = vector.broadcast %c127_i32 : i32 to vector<8x128xi32>
    %18 = arith.cmpi eq, %11, %17 : vector<8x128xi32>
    %c127_i32_8 = arith.constant 127 : i32
    %19 = tpu.dynamic_rotate %9 by %c127_i32_8 dim 1 : vector<8x128xf32>, i32 -> vector<8x128xf32>
    %cst_9 = arith.constant 0.000000e+00 : f32
    %20 = vector.broadcast %cst_9 : f32 to vector<8x128xf32>
    %21 = arith.select %18, %20, %19 : vector<8x128xi1>, vector<8x128xf32>
    %22 = tpu.concatenate %16, %9, %21 in 0 : vector<8x128xf32>, vector<8x128xf32>, vector<8x128xf32> -> vector<24x128xf32>
    %c0_10 = arith.constant 0 : index
    %c0_11 = arith.constant 0 : index
    %23 = vector.load %arg3[%c0_10, %c0_11] : memref<8x24xf32, #tpu.memory_space<vmem>>, vector<8x24xf32>
    %cst_12 = arith.constant dense<0.000000e+00> : vector<8x128xf32>
    %24 = tpu.matmul %23, %22, %cst_12 {dimension_numbers = #tpu.dot_dimension_numbers<[1], [0], [0], [1], [0, 0, 1, 1], [], []>} : vector<8x24xf32>, vector<24x128xf32>, vector<8x128xf32> -> vector<8x128xf32>
    %c16 = arith.constant 16 : index
    %c0_13 = arith.constant 0 : index
    %25 = vector.load %arg5[%c16, %c0_13] : memref<32x1xf32, #tpu.memory_space<vmem>>, vector<8x1xf32>
    %26 = vector.broadcast %25 : vector<8x1xf32> to vector<8x128xf32>
    %27 = arith.addf %24, %26 : vector<8x128xf32>
    %cst_14 = arith.constant 0.000000e+00 : f32
    %28 = vector.broadcast %cst_14 : f32 to vector<8x128xf32>
    %29 = arith.maximumf %27, %28 : vector<8x128xf32>
    %c0_15 = arith.constant 0 : index
    %c0_16 = arith.constant 0 : index
    %30 = vector.load %arg4[%c0_15, %c0_16] : memref<6x8xf32, #tpu.memory_space<vmem>>, vector<6x8xf32>
    %cst_17 = arith.constant dense<0.000000e+00> : vector<6x128xf32>
    %31 = tpu.matmul %30, %29, %cst_17 {dimension_numbers = #tpu.dot_dimension_numbers<[1], [0], [0], [1], [0, 0, 1, 1], [], []>} : vector<6x8xf32>, vector<8x128xf32>, vector<6x128xf32> -> vector<6x128xf32>
    %c24 = arith.constant 24 : index
    %c0_18 = arith.constant 0 : index
    %32 = vector.load %arg5[%c24, %c0_18] : memref<32x1xf32, #tpu.memory_space<vmem>>, vector<6x1xf32>
    %33 = vector.broadcast %32 : vector<6x1xf32> to vector<6x128xf32>
    %34 = arith.addf %31, %33 : vector<6x128xf32>
    %cst_19 = arith.constant 0.000000e+00 : f32
    %35 = vector.broadcast %cst_19 : f32 to vector<6x128xf32>
    %36 = arith.maximumf %34, %35 : vector<6x128xf32>
    %37 = arith.addf %36, %10 : vector<6x128xf32>
    %c0_20 = arith.constant 0 : index
    %c0_21 = arith.constant 0 : index
    %c0_22 = arith.constant 0 : index
    %38 = vector.load %arg6[%c0_20, %c0_21, %c0_22] : memref<1x6x128xf32, #tpu.memory_space<vmem>>, vector<1x6x128xf32>
    %39 = vector.shape_cast %38 : vector<1x6x128xf32> to vector<6x128xf32>
    %40 = vector.shape_cast %37 : vector<6x128xf32> to vector<1x6x128xf32>
    tpu.vector_store %arg6[%c0_20, %c0_21, %c0_22], %40 {strides = array<i32>} : memref<1x6x128xf32, #tpu.memory_space<vmem>>, vector<1x6x128xf32>,
    return
  }
  func.func @transform_0(%arg0: i32) -> (i32, i32, i32) {
    %c0_i32 = arith.constant 0 : i32
    %c0_i32_0 = arith.constant 0 : i32
    %c0_i32_1 = arith.constant 0 : i32
    return %arg0, %c0_i32, %c0_i32_0 : i32, i32, i32
  }
  func.func @transform_1(%arg0: i32) -> (i32, i32) {
    %c0_i32 = arith.constant 0 : i32
    %c0_i32_0 = arith.constant 0 : i32
    %c0_i32_1 = arith.constant 0 : i32
    return %c0_i32, %c0_i32_0 : i32, i32
  }
  func.func @transform_2(%arg0: i32) -> (i32, i32) {
    %c0_i32 = arith.constant 0 : i32
    %c0_i32_0 = arith.constant 0 : i32
    %c0_i32_1 = arith.constant 0 : i32
    return %c0_i32, %c0_i32_0 : i32, i32
  }
  func.func @transform_3(%arg0: i32) -> (i32, i32) {
    %c0_i32 = arith.constant 0 : i32
    %c0_i32_0 = arith.constant 0 : i32
    %c0_i32_1 = arith.constant 0 : i32
    return %c0_i32, %c0_i32_0 : i32, i32
  }
  func.func @transform_4(%arg0: i32) -> (i32, i32) {
    %c0_i32 = arith.constant 0 : i32
    %c0_i32_0 = arith.constant 0 : i32
    %c0_i32_1 = arith.constant 0 : i32
    return %c0_i32, %c0_i32_0 : i32, i32
  }
  func.func @transform_5(%arg0: i32) -> (i32, i32, i32) {
    %c0_i32 = arith.constant 0 : i32
    %c0_i32_0 = arith.constant 0 : i32
    %c0_i32_1 = arith.constant 0 : i32
    return %arg0, %c0_i32, %c0_i32_0 : i32, i32, i32
  }
}

</mosaic_0001>

<bundles_post_ra>
// kernel: tpu_custom_call.1
= control target key start
LH: loop header
LB: loop body
LE: loop exit
PB: predicated region body
PF: predicated region fallthrough
CT: control target
= control target key end

     0   :  { %s665_s18 = smov 0   ;;  %s710_s0 = inlined_call_operand.vmem [shape: f32[2,4,128], index: 0, kind: input, shape index: {}]   ;;  %s711_s1 = inlined_call_operand.vmem [shape: f32[14,4], index: 1, kind: input, shape index: {}]   ;;  %s712_s2 = inlined_call_operand.vmem [shape: f32[8,24], index: 2, kind: input, shape index: {}]   ;;  %s713_s3 = inlined_call_operand.vmem [shape: f32[6,8], index: 3, kind: input, shape index: {}]   ;;  %s714_s4 = inlined_call_operand.vmem [shape: f32[32,1], index: 4, kind: input, shape index: {}]   ;;  %s715_s5 = inlined_call_operand.vmem [shape: f32[2,6,128], index: 5, kind: output, shape index: {}]  }
   0x1 LB: > { %s551_s19 = sadd.s32 4294967295, %s626_s18   ;;  %p555_p0 = scmp.ge.s32.totalorder %s626_s18, 1  ;;  %s626_s18 = sphi %s665_s18, %s15_s18  }
   0x2   : > { %p186_p1 = scmp.lt.s32.totalorder %s626_s18, 3 }
   0x4   : > { %p187_p2 = pnand %p555_p0, %p186_p1 }
   0x5   : > { %p212_p3 = scmp.lt.s32.totalorder (!%p187_p2), %s551_s19, 1  ;;  %v221_v0 = vld [vmem:[%s711_s1] sm:$0xff] (!%p187_p2)  ;;  %vm235_vm0 = vcmask (!%p187_p2), 31744   ;;  %v628_v2 = vmov (!%p187_p2), 0   ;;  %vm242_vm1 = vcmask (!%p187_p2), 1043456   ;;  %v629_v5 = vmov (!%p187_p2), 0.0|0.0  }
   0x6   : > { %190 = sbr.rel (%p187_p2) target bundleno = 794 (0x31a), region = 40  ;;  %582 = vmatprep.mubr.msk.f32.mxu0 (!%p187_p2), %vm235_vm0, %v221_v0  ;;  %v223_v1 = vld [vmem:[%s714_s4] sm:$0xff] (!%p187_p2)  ;;  %618 = vset.pattern.permute.xlu0 (!%p187_p2), %v628_v2  ;;  %v222_v4 = vld [vmem:[%s711_s1 + $0x8] sm:$0x3f] (!%p187_p2)  ;;  %v630_v6 = vmov (!%p187_p2), 0.0   ;;  %vm631_vm2 = vmmov (!%p187_p2), 0   ;;  %v322_v15 = vlaneseq (!%p187_p2) }
   0x7   : > { %619 = vset.pattern.permute.xlu1 (!%p187_p2), %v628_v2  ;;  %227 = vperm.xlu0 (!%p187_p2), %618, %v223_v1   ;;  %s632_s30 = smov (!%p187_p2), 127   ;;  %s633_s6 = smov (!%p187_p2), 1   ;;  %v333_v12 = vld [vmem:[%s714_s4 + $0x10] sm:$0xff] (!%p187_p2)  ;;  %v415_v13 = vld [vmem:[%s714_s4 + $0x18] sm:$0x3f] (!%p187_p2)  ;;  %vm634_vm4 = vmmov (!%p187_p2), 1  }
   0x8   : > { %599 = vmatprep.subr.bf16.mxu1 (!%p187_p2), %v629_v5  ;;  %591 = vmatprep.mubr.msk.f32.mxu1 (!%p187_p2), %vm631_vm2, %v630_v6  ;;  %v224_v14 = vld [vmem:[%s714_s4 + $0x8] sm:$0x3f] (!%p187_p2)  ;;  %v323_v16 = vand.u32 (!%p187_p2), 127, %v322_v15  ;;  %v332_v19 = vld [vmem:[%s712_s2] sm:$0xff] (!%p187_p2)  ;;  %vm339_vm7 = vcmask (!%p187_p2), 195584   ;;  %vm421_vm8 = vcmask (!%p187_p2), 64512  }
   0x9   : > { %v414_v26 = vld [vmem:[%s713_s3] sm:$0x3f] (!%p187_p2) }
   0xa   : > { %vm569_vm3 = vcmp.ne.s32.totalorder (!%p187_p2), %v323_v16, 0  ;;  %vm570_vm6 = vcmp.ne.s32.totalorder (!%p187_p2), %v323_v16, 127 }
   0xb   : > { %vm601_vm5 = vmpackc.low (!%p187_p2), %vm634_vm4, %vm569_vm3 }
   0xd   : > { %s717_s19 = smov (!%p212_p3, %s551_s19), 1 }
   0xe   : > { %s556_s24 = sshll.u32 %s717_s19, 2  ;;  %s557_s17 = sshll.u32 %s717_s19, 3 }
   0xf   : > { %s215_s27 = scalar_lea.vmem %s710_s0, %s556_s24  ;;  %s219_s22 = scalar_lea.vmem %s715_s5, %s557_s17 }
  0x10   : > { %v220_v3 = vld [vmem:[%s215_s27] sm:$0xf] }
  0x11   : > { %580 = vmatprep.subr.msk.mxu0 %vm242_vm1, %v220_v3 }
  0x12   : > { %581 = vmatpush3.msk.msra.mxu0 %vm242_vm1, %v220_v3 }
  0x13   : > { %583 = vmatmul.mubr.msk.f32.vlgmr.msra.gmra.mrb[0].mxu0 %vm235_vm0, %v222_v4  ;;  %594 = vmatprep.subr.mxu0 %v630_v6 }
  0x14   : > { %596 = vmatprep.mubr.msk.f32.mxu0 %vm631_vm2, %v630_v6 }
  0x86   : > { %v228_v7 = vpop.permute.xlu0 %227 }
  0xe6   : > { %v584_v8 = vpop.f32.mrb[0].mxu0 }
  0xe7   : > { %v312_v9 = vpop.f32.mrb[1].mxu0 }
  0xe8   : > { %v313_v10 = vadd.f32 %v312_v9, %v228_v7 }
  0xea   : > { %v321_v11 = vmax.f32 %v313_v10, 0.0 }
  0xec   : > { %329 = vrot.lane.b32.xlu1 %v321_v11, %s632_s30  ;;  %325 = vrot.lane.b32.xlu0 %v321_v11, %s633_s6 }
  0xf0   : > { %336 = vperm.xlu1 %619, %v333_v12   ;;  %418 = vperm.xlu0 %618, %v415_v13  }
  0xf4   : > { %232 = vperm.xlu1 %619, %v224_v14  }
 0x15e   : > { %v326_v17 = vpop.permute.xlu0 %325  ;;  %v330_v20 = vpop.permute.xlu1 %329 }
 0x15f   : > { %v600_v18 = vpack.c.bf16 %v321_v11, %v326_v17 }
 0x161   : > { %602 = vmatpush3.bf16.msk.msra.mxu1 %vm601_vm5, %v600_v18 }
 0x162   : > { %589 = vmatprep.subr.mxu1 %v630_v6 }
 0x165   : > { %590 = vmatpush3.msk.msra.mxu1 %vm570_vm6, %v330_v20 }
 0x166   : > { %592 = vmatmul.mubr.msk.f32.vlgmr.msra.gmra.mrb[0].mxu1 %vm339_vm7, %v332_v19 }
 0x16f   : > { %v337_v21 = vpop.permute.xlu1 %336  ;;  %v419_v27 = vpop.permute.xlu0 %418 }
 0x173   : > { %v233_v28 = vpop.permute.xlu1 %232 }
 0x174   : > { %v318_v32 = vadd.f32 %v584_v8, %v233_v28 }
 0x239   : > { %v409_v22 = vpop.f32.mrb[0].mxu1 }
 0x23a   : > { %v410_v23 = vadd.f32 %v409_v22, %v337_v21  ;;  %v593_v24 = vpop.f32.mrb[1].mxu1 }
 0x23c   : > { %v413_v25 = vmax.f32 %v410_v23, 0.0 }
 0x23e   : > { %595 = vmatpush3.msra.mxu0 %v413_v25 }
 0x23f   : > { %597 = vmatmul.mubr.msk.f32.vlgmr.msra.gmra.mrb[2].mxu0 %vm421_vm8, %v414_v26 }
 0x312   : > { %v491_v29 = vpop.f32.mrb[2].mxu0 }
 0x313   : > { %v492_v30 = vadd.f32 %v491_v29, %v419_v27  ;;  %v598_v31 = vpop.f32.mrb[3].mxu0 }
 0x315   : > { %v495_v33 = vmax.f32 %v492_v30, 0.0 }
 0x317   : > { %v496_v34 = vadd.f32 %v495_v33, %v318_v32 }
 0x319   : > { %497 = vst [vmem:[%s219_s22] sm:$0x3f] %v496_v34 }
 0x31a PF: > { %s15_s18 = sadd.s32 1, %s626_s18  }
 0x31b   : > { %p12_p4 = scmp.ge.s32.totalorder %s15_s18, 4  }
 0x31d   :  { %14 = sbr.rel (!%p12_p4) target bundleno = 1 (0x1), region = 70 }

</bundles_post_ra>
